<compile_context>
chip_gen: v7x
topology: tpu7x:2x2x1
jax: 0.10.0
libtpu: 0.0.40
codegen_flags: <defaults>
</compile_context>

<pallas_src>
import jax
import jax.numpy as jnp
from jax import lax
from jax.experimental import pallas as pl
from jax.experimental.pallas import tpu as pltpu

_MiB = 1024 * 1024


def _round_up(x: int, m: int) -> int:
    return ((x + m - 1) // m) * m


def _cdiv(a: int, b: int) -> int:
    return -(-a // b)


def _vmem_capacity_bytes() -> int:
    try:
        return int(pltpu.get_tpu_info().vmem_capacity_bytes)
    except Exception:
        pass
    try:
        kind = jax.devices()[0].device_kind.lower()
        if ("v5" in kind) or ("v6" in kind):
            return 128 * _MiB
    except Exception:
        pass
    return 64 * _MiB  # conservative: v7x has 64 MiB VMEM per TensorCore


def _budgets():
    cap = _vmem_capacity_bytes()
    if cap >= 128 * _MiB:  # v5e / v6e
        return {"x_buf": 8 * _MiB, "w_resident": 8 * _MiB, "vmem_limit": 96 * _MiB}
    # v7x (64 MiB per TC): halve the tile byte budget, keep headroom below 64 MiB
    return {"x_buf": 4 * _MiB, "w_resident": 4 * _MiB, "vmem_limit": 48 * _MiB}


def _choose_k_tile(D: int):
    """Returns (tk, D_pad). tk is either the full D or a multiple of 128."""
    if D <= 4096:
        return D, D
    for tk in (4096, 2048, 1024, 512, 256, 128):
        if D % tk == 0:
            return tk, D
    # No multiple-of-128 divisor: the wrapper zero-pads the contraction dim so
    # every K tile is exact and K pipelining (bounded tiles) is preserved.
    return 512, _round_up(D, 512)


def _choose_batch_tile(B: int, tk: int, x_itemsize: int, x_buf_budget: int) -> int:
    bytes_per_row = max(1, tk * x_itemsize)
    tm = (x_buf_budget // bytes_per_row // 8) * 8
    tm = max(8, min(tm, 8192))
    # At least 2 batch tiles whenever the batch can be split: lets the
    # "parallel" grid axis shard across v7x's two TensorCores; one extra
    # ~0.35us grid step is noise on single-TC v5e/v6e.
    tm = min(tm, max(8, _round_up(_cdiv(B, 2), 8)))
    return tm


def _estimate_vmem_bytes(tm, tk, O, n_k, x_itemsize, w_itemsize,
                         weight_resident, D_pad):
    est = 2 * tm * tk * x_itemsize                    # x tile, double-buffered
    if weight_resident:
        est += 2 * O * D_pad * w_itemsize             # resident weight (worst case 2 bufs)
    else:
        est += 2 * O * tk * w_itemsize                # weight K-tile, double-buffered
    est += 2 * tm * max(O, 1) * 4                     # output tile
    if n_k > 1:
        acc_cols = 128 if O == 1 else O
        est += tm * acc_cols * 4                      # f32 accumulator scratch
    est += 2 * _round_up(max(O, 1), 128) * 4          # bias
    return est


def _make_single_k_kernel(output_dim: int):
    """D fits one K block: no accumulator, no pl.when, bias folded into the store."""

    def kernel(x_ref, w_ref, b_ref, o_ref):
        x = x_ref[...].astype(jnp.float32)            # [tm, D]  (== X.float())
        w = w_ref[...].astype(jnp.float32)            # [O,  D]  natural nn.Linear layout
        if output_dim == 1:
            # O == 1: VPU broadcast-multiply + one XLU lane reduce (no N=1 MXU matmul).
            res = jnp.sum(x * w, axis=-1, keepdims=True) + b_ref[0]
        else:
            res = lax.dot_general(
                x, w, (((1,), (1,)), ((), ())),
                preferred_element_type=jnp.float32,
                precision=lax.Precision.HIGHEST) + b_ref[...]
        o_ref[...] = res.astype(o_ref.dtype)

    return kernel


def _make_multi_k_kernel(output_dim: int, tk: int, weight_resident: bool):
    """Tiled reduction over the wide_dim axis with an f32 VMEM accumulator."""

    def kernel(x_ref, w_ref, b_ref, o_ref, acc_ref):
        k = pl.program_id(1)

        @pl.when(k == 0)
        def _init():
            acc_ref[...] = jnp.zeros_like(acc_ref)

        x = x_ref[...].astype(jnp.float32)            # [tm, tk]
        if weight_resident:
            w = w_ref[k].astype(jnp.float32)          # [O, tk] slab of resident [n_k, O, tk]
        else:
            w = w_ref[...].astype(jnp.float32)        # [O, tk]

        if output_dim == 1:
            # Lane-dense accumulation: per-128-lane partial sums each K step
            # (VPU adds on static lane-aligned slices), single XLU reduce at the end.
            xw = x * w                                # [tm, tk] (w broadcasts over sublanes)
            partial = xw[:, 0:128]
            for j in range(1, tk // 128):
                partial = partial + xw[:, j * 128:(j + 1) * 128]
            acc_ref[...] += partial                   # [tm, 128]
        else:
            acc_ref[...] += lax.dot_general(
                x, w, (((1,), (1,)), ((), ())),
                preferred_element_type=jnp.float32,
                precision=lax.Precision.HIGHEST)      # [tm, O]

        @pl.when(k == pl.num_programs(1) - 1)
        def _finalize():
            if output_dim == 1:
                res = jnp.sum(acc_ref[...], axis=-1, keepdims=True) + b_ref[0]
            else:
                res = acc_ref[...] + b_ref[...]
            o_ref[...] = res.astype(o_ref.dtype)

    return kernel


def wide_model_forward(x, weight, bias):
    """Pallas equivalent of WideModel.forward.

    x:      [B, wide_dim]          any float/int dtype (cast to f32 inside the kernel)
    weight: [output_dim, wide_dim] natural PyTorch nn.Linear layout, native dtype
    bias:   [output_dim]
    returns [B, output_dim] float32
    """
    B, D = x.shape
    O, D_w = weight.shape
    assert D == D_w and bias.shape == (O,)

    budgets = _budgets()
    tk, D_pad = _choose_k_tile(D)
    if D_pad != D:
        # Rare fallback (D > 4096 with no multiple-of-128 divisor): zero-pad the
        # contraction dim -> reduction stays exact, tiles stay bounded.
        x = jnp.pad(x, ((0, 0), (0, D_pad - D)))
        weight = jnp.pad(weight, ((0, 0), (0, D_pad - D)))
    n_k = D_pad // tk

    x_itemsize = x.dtype.itemsize
    w_itemsize = weight.dtype.itemsize

    # Keep the whole weight VMEM-resident (DMA'd once) only when re-fetching its
    # K-tiles for every batch tile would actually matter (large O) and it fits.
    weight_resident = (n_k > 1 and O >= 64
                       and 2 * O * D_pad * w_itemsize <= budgets["w_resident"])

    tm = _choose_batch_tile(B, tk, x_itemsize, budgets["x_buf"])
    while (tm > 8 and
           _estimate_vmem_bytes(tm, tk, O, n_k, x_itemsize, w_itemsize,
                                weight_resident, D_pad)
           > 0.8 * budgets["vmem_limit"]):
        tm = max(8, ((tm // 2) // 8) * 8)
    n_b = _cdiv(B, tm)

    bias_in_smem = (O == 1)
    if bias_in_smem:
        b_arg = bias.astype(jnp.float32)                   # (1,) scalar in SMEM
    else:
        b_arg = bias.astype(jnp.float32).reshape(1, O)     # (1, O) in VMEM

    compiler_params = pltpu.CompilerParams(
        dimension_semantics=(("parallel",) if n_k == 1
                             else ("parallel", "arbitrary")),
        vmem_limit_bytes=int(budgets["vmem_limit"]),
    )

    if n_k == 1:
        # Common case (wide_dim <= 4096): single K block.
        kernel = _make_single_k_kernel(O)
        in_specs = [
            pl.BlockSpec((tm, D_pad), lambda i: (i, 0)),       # activations tile
            pl.BlockSpec((O, D_pad), lambda i: (0, 0)),        # full weight [O, D]
            (pl.BlockSpec(memory_space=pltpu.MemorySpace.SMEM) if bias_in_smem
             else pl.BlockSpec((1, O), lambda i: (0, 0))),
        ]
        out_specs = pl.BlockSpec((tm, O), lambda i: (i, 0))
        grid = (n_b,)
        scratch_shapes = []
        w_arg = weight
    else:
        kernel = _make_multi_k_kernel(O, tk, weight_resident)
        if weight_resident:
            # [O, D] -> [n_k, O, tk] so K tiles are indexed on the leading axis of
            # a single resident VMEM block (one small host-side copy of the weight).
            w_arg = weight.reshape(O, n_k, tk).swapaxes(0, 1)
            w_spec = pl.BlockSpec((n_k, O, tk), lambda i, k: (0, 0, 0))
        else:
            w_arg = weight
            w_spec = pl.BlockSpec((O, tk), lambda i, k: (0, k))
        in_specs = [
            pl.BlockSpec((tm, tk), lambda i, k: (i, k)),       # activations tile
            w_spec,
            (pl.BlockSpec(memory_space=pltpu.MemorySpace.SMEM) if bias_in_smem
             else pl.BlockSpec((1, O), lambda i, k: (0, 0))),
        ]
        out_specs = pl.BlockSpec((tm, O), lambda i, k: (i, 0))
        grid = (n_b, n_k)
        acc_cols = 128 if O == 1 else O
        scratch_shapes = [pltpu.VMEM((tm, acc_cols), jnp.float32)]

    return pl.pallas_call(
        kernel,
        out_shape=jax.ShapeDtypeStruct((B, O), jnp.float32),
        grid=grid,
        in_specs=in_specs,
        out_specs=out_specs,
        scratch_shapes=scratch_shapes,
        compiler_params=compiler_params,
    )(x, w_arg, b_arg)


def reference_forward(x, weight, bias):
    xf = x.astype(jnp.float32)
    wf = weight.astype(jnp.float32)
    return jnp.einsum("bd,od->bo", xf, wf,
                      precision=jax.lax.Precision.HIGHEST) + bias.astype(jnp.float32)


if __name__ == "__main__":
    key = jax.random.PRNGKey(0)

    def check(name, batch, wide_dim, output_dim, x_dtype, key, atol, rtol):
        k_x, k_w, k_b, key = jax.random.split(key, 4)
        bound = 1.0 / (wide_dim ** 0.5)
        weight = jax.random.uniform(k_w, (output_dim, wide_dim), jnp.float32, -bound, bound)
        bias = jax.random.uniform(k_b, (output_dim,), jnp.float32, -bound, bound)
        x = jax.random.normal(k_x, (batch, wide_dim), jnp.float32).astype(x_dtype)

        out = jax.block_until_ready(wide_model_forward(x, weight, bias))
        ref = reference_forward(x, weight, bias)
        assert out.shape == (batch, output_dim), f"bad shape ({name})"
        assert jnp.allclose(out, ref, atol=atol, rtol=rtol), f"mismatch vs reference ({name})"
        return key

    # 1) module defaults (output_dim=1), single-K fast path, f32
    key = check("O=1 single-K", 8, 32, 1, jnp.float32, key, 1e-5, 1e-5)
    # 2) general O, bf16 activations cast in-kernel, single-K fast path
    key = check("O=8 single-K bf16", 16, 256, 8, jnp.bfloat16, key, 1e-3, 1e-3)
    # 3) multi-K reduction path with the lane-dense O==1 accumulator
    key = check("O=1 multi-K", 16, 8192, 1, jnp.float32, key, 2e-4, 2e-4)
    # 4) multi-K path with VMEM-resident weight (O >= 64)
    key = check("O=64 multi-K resident", 16, 8192, 64, jnp.float32, key, 2e-4, 2e-4)

    print("KERNEL_OK")
</pallas_src>

<mosaic_0001>
module attributes {stable_mosaic.version = 11 : i64} {
  func.func @kernel(%arg0: i32, %arg1: memref<8x32xf32, #tpu.memory_space<vmem>>, %arg2: memref<1x32xf32, #tpu.memory_space<vmem>>, %arg3: memref<1xf32, #tpu.memory_space<smem>>, %arg4: memref<8x1xf32, #tpu.memory_space<vmem>>) attributes {dimension_semantics = [#tpu.dimension_semantics<parallel>], iteration_bounds = array<i64: 1>, scalar_prefetch = 0 : i64, scratch_operands = 0 : i64, tpu.core_type = #tpu.core_type<tc>, window_params = [{transform_indices = @transform_0, window_bounds = array<i64: 8, 32>}, {pipeline_mode = #tpu.pipeline_mode<synchronous>, transform_indices = @transform_1, window_bounds = array<i64: 1, 32>}, {transform_indices = @transform_2, window_bounds = array<i64: 1>}, {transform_indices = @transform_3, window_bounds = array<i64: 8, 1>}]} {
    %c0 = arith.constant 0 : index
    %c0_0 = arith.constant 0 : index
    %0 = vector.load %arg1[%c0, %c0_0] : memref<8x32xf32, #tpu.memory_space<vmem>>, vector<8x32xf32>
    %c0_1 = arith.constant 0 : index
    %c0_2 = arith.constant 0 : index
    %1 = vector.load %arg2[%c0_1, %c0_2] : memref<1x32xf32, #tpu.memory_space<vmem>>, vector<1x32xf32>
    %2 = vector.broadcast %1 : vector<1x32xf32> to vector<8x32xf32>
    %3 = arith.mulf %0, %2 : vector<8x32xf32>
    %cst = arith.constant dense<0.000000e+00> : vector<8xf32>
    %4 = vector.multi_reduction <add>, %3, %cst [1] : vector<8x32xf32> to vector<8xf32>
    %5 = vector.shape_cast %4 : vector<8xf32> to vector<8x1xf32>
    %c0_3 = arith.constant 0 : index
    %6 = memref.load %arg3[%c0_3] : memref<1xf32, #tpu.memory_space<smem>>
    %7 = vector.broadcast %6 : f32 to vector<8x1xf32>
    %8 = arith.addf %5, %7 : vector<8x1xf32>
    %c0_4 = arith.constant 0 : index
    %c0_5 = arith.constant 0 : index
    %9 = vector.load %arg4[%c0_4, %c0_5] : memref<8x1xf32, #tpu.memory_space<vmem>>, vector<8x1xf32>
    tpu.vector_store %arg4[%c0_4, %c0_5], %8 {strides = array<i32>} : memref<8x1xf32, #tpu.memory_space<vmem>>, vector<8x1xf32>,
    return
  }
  func.func @transform_0(%arg0: i32) -> (i32, i32) {
    %c0_i32 = arith.constant 0 : i32
    %c0_i32_0 = arith.constant 0 : i32
    return %arg0, %c0_i32 : i32, i32
  }
  func.func @transform_1(%arg0: i32) -> (i32, i32) {
    %c0_i32 = arith.constant 0 : i32
    %c0_i32_0 = arith.constant 0 : i32
    %c0_i32_1 = arith.constant 0 : i32
    return %c0_i32, %c0_i32_0 : i32, i32
  }
  func.func @transform_2(%arg0: i32) -> i32 {
    %c0_i32 = arith.constant 0 : i32
    %c0_i32_0 = arith.constant 0 : i32
    return %c0_i32 : i32
  }
  func.func @transform_3(%arg0: i32) -> (i32, i32) {
    %c0_i32 = arith.constant 0 : i32
    %c0_i32_0 = arith.constant 0 : i32
    return %arg0, %c0_i32 : i32, i32
  }
}

</mosaic_0001>

<bundles_post_ra>
// kernel: tpu_custom_call.1
= control target key start
LH: loop header
LB: loop body
LE: loop exit
PB: predicated region body
PF: predicated region fallthrough
CT: control target
= control target key end

     0   :  { %9 = vsyncpa [#allocation4], 0  ;;  %s76_s12 = smov [#allocation3]   ;;  %s118_s0 = inlined_call_operand.hbm [shape: f32[8,32], index: 0, kind: input, shape index: {}]   ;;  %s119_s1 = inlined_call_operand.vmem [shape: f32[1,32], index: 1, kind: input, shape index: {}]   ;;  %s120_s2 = inlined_call_operand.<no memory space> [shape: f32[1], index: 2, kind: input, shape index: {}]   ;;  %s121_s3 = inlined_call_operand.vmem [shape: f32[8,1], index: 3, kind: output, shape index: {}]  }
   0x1   :  { %s16_s13 = sshll.u32 %s76_s12, 4  ;;  %s52_s16 = scalar_lea.hbm %s118_s0, 128  ;;  %s17_s13 = int_to_ptr.vmem [resolvable:$true] %s16_s13 }
   0x2   :  { %p53_p0 = scmp.ne.s32.totalorder %s118_s0, %s52_s16  ;;  %p56_p1 = scmp.lt.u32.totalorder %s52_s16, %s118_s0 }
   0x4   :  { %p58_p2 = pnand %p56_p1, %p53_p0 }
   0x6   :  { %61 = shalt.err (!%p58_p2)
}
   0x7   :  { %s62_s21 = scalar_lea.vmem %s17_s13, 128  ;;  %p67_p4 = scmp.lt.s32.totalorder %s17_s13, %s17_s13 }
   0x8   :  { %p63_p3 = scmp.ne.s32.totalorder %s17_s13, %s62_s21  ;;  %p68_p5 = scmp.lt.s32.totalorder %s62_s21, %s62_s21 }
   0xa   :  { %p69_p6 = por %p68_p5, %p67_p4 }
   0xc   :  { %p70_p7 = pnand %p69_p6, %p63_p3 }
   0xe   :  { %73 = shalt.err (!%p70_p7)
}
   0xf   :  { %19 = dma.hbm_to_vmem [thread:$0]  %s118_s0, 128, %s17_s13, [#allocation4]  }
  0x10   :  { %74 = dma.done.wait [#allocation4], 128  }
  0x11   :  { %75 = vsyncadd [#allocation4], 4294967168  ;;  %v27_v0 = vld [vmem:[#allocation3] sm:$0xff]  ;;  %vm36_vm0 = vcmask 261120   ;;  %v41_v4 = vstv %s120_s2  ;;  %vm43_vm1 = vcmask 7168  }
  0x12   :  { %v50_v1 = vld [vmem:[%s119_s1] ss:$0 sm:$0xff] }
  0x13   :  { %v35_v2 = vmul.f32 %v50_v1, %v27_v0 }
  0x15   :  { %v37_v3 = vsel %vm36_vm0, %v35_v2, 0.0 }
  0x16   :  { %38 = vadd.xlane.f32.xlu0 %v37_v3 }
  0xa3   :  { %v39_v5 = vpop.xlane.xlu0 %38 }
  0xa4   :  { %v42_v6 = vadd.f32 %v41_v4, %v39_v5 }
  0xa6   :  { %44 = vst.msk [vmem:[%s121_s3] sm:$0xff] %vm43_vm1, %v42_v6 }
  0xa7   :  { %49 = vsyncpa [#allocation4], 1 }

</bundles_post_ra>
